<compile_context>
chip_gen: v7x
topology: tpu7x:2x2x1
jax: 0.10.0
libtpu: 0.0.40
codegen_flags: <defaults>
</compile_context>

<pallas_src>
import functools

import jax
import jax.numpy as jnp
from jax.experimental import pallas as pl
from jax.experimental.pallas import tpu as pltpu

TILE_BP = 1024           # packed (folded) batch rows per grid step
MAX_PACKED_WIDTH = 512   # cap on fold*dim so packed weights stay tiny


def _qnet_kernel(x_ref, w1_ref, b1_ref, w2_ref, b2_ref, w3_ref, b3_ref, o_ref):
    mm = w1_ref.dtype  # bf16 MXU fast path; accumulation is f32.
    # hidden layer 1: Linear + ReLU  (bias / ReLU in f32)
    h = jnp.dot(x_ref[...].astype(mm), w1_ref[...],
                preferred_element_type=jnp.float32)
    h = jnp.maximum(h + b1_ref[...], 0.0)
    # hidden layer 2: Linear + ReLU
    h = jnp.dot(h.astype(mm), w2_ref[...],
                preferred_element_type=jnp.float32)
    h = jnp.maximum(h + b2_ref[...], 0.0)
    # output layer: Linear + identity (kept fully f32; it is tiny)
    o = jnp.dot(h, w3_ref[...], preferred_element_type=jnp.float32)
    o_ref[...] = (o + b3_ref[...]).astype(o_ref.dtype)


def _fold_factor(dims):
    """How many batch rows to fold onto the 128-lane axis."""
    in_dim = dims[0]
    f = max(1, 128 // in_dim)
    while f > 1 and max(d * f for d in dims) > MAX_PACKED_WIDTH:
        f //= 2
    return f


def _block_diag(w, fold):
    """fold copies of w on the diagonal (built once, outside the kernel)."""
    r, c = w.shape
    out = jnp.zeros((fold * r, fold * c), w.dtype)
    for j in range(fold):
        out = out.at[j * r:(j + 1) * r, j * c:(j + 1) * c].set(w)
    return out


def prepare_params(torch_params, matmul_dtype=jnp.bfloat16):
    """One-time layout/dtype conversion from PyTorch convention (W: (out, in))."""
    w1, w2, w3 = torch_params["w1"], torch_params["w2"], torch_params["w3"]
    b1, b2, b3 = torch_params["b1"], torch_params["b2"], torch_params["b3"]
    in_dim, h1 = w1.shape[1], w1.shape[0]
    h2, out_dim = w2.shape[0], w3.shape[0]
    fold = _fold_factor((in_dim, h1, h2, out_dim))
    return {
        # hidden layers: bf16 operands for the MXU
        "w1": _block_diag(w1.T.astype(matmul_dtype), fold),   # (F*in,  F*h1)
        "w2": _block_diag(w2.T.astype(matmul_dtype), fold),   # (F*h1,  F*h2)
        # output layer kept f32 (tiny, exact)
        "w3": _block_diag(w3.T.astype(jnp.float32), fold),    # (F*h2,  F*out)
        "b1": jnp.tile(b1.astype(jnp.float32).reshape(1, -1), (1, fold)),
        "b2": jnp.tile(b2.astype(jnp.float32).reshape(1, -1), (1, fold)),
        "b3": jnp.tile(b3.astype(jnp.float32).reshape(1, -1), (1, fold)),
    }


@functools.partial(jax.jit, static_argnames=("tile_bp",))
def qnet_forward(x, params, tile_bp=TILE_BP):
    """x: (batch, in_dim) f32 (or bf16).  params: output of prepare_params()."""
    batch, in_dim = x.shape
    w1, w2, w3 = params["w1"], params["w2"], params["w3"]
    b1, b2, b3 = params["b1"], params["b2"], params["b3"]
    fold = w1.shape[0] // in_dim
    packed_out = w3.shape[1]             # fold * out_dim
    out_dim = packed_out // fold

    # Fold `fold` consecutive rows onto the lane axis (free, row-major reshape).
    pad = (-batch) % fold
    if pad:
        x = jnp.pad(x, ((0, pad), (0, 0)))
    bp = (batch + pad) // fold
    x_p = x.reshape(bp, fold * in_dim)

    # Tile the packed-batch axis. Keep >= 2 grid steps when possible so the
    # "parallel" axis can shard across v7x's two TensorCores.
    if bp <= 16:
        tb = bp
    else:
        half = -(-bp // 2)               # ceil(bp / 2)
        half = -(-half // 8) * 8         # round up to a multiple of 8
        tb = min(tile_bp, half)
    grid = (pl.cdiv(bp, tb),)

    def pinned(shape):  # same block every step -> stays VMEM-resident
        return pl.BlockSpec(shape, lambda i: (0, 0))

    flops = 2 * bp * (w1.shape[0] * w1.shape[1]
                      + w2.shape[0] * w2.shape[1]
                      + w3.shape[0] * w3.shape[1])
    bytes_accessed = (
        x_p.size * x_p.dtype.itemsize
        + sum(p.size * p.dtype.itemsize for p in (w1, b1, w2, b2, w3, b3))
        + bp * packed_out * 4)

    out_p = pl.pallas_call(
        _qnet_kernel,
        out_shape=jax.ShapeDtypeStruct((bp, packed_out), jnp.float32),
        grid=grid,
        in_specs=[
            pl.BlockSpec((tb, fold * in_dim), lambda i: (i, 0)),
            pinned(w1.shape), pinned(b1.shape),
            pinned(w2.shape), pinned(b2.shape),
            pinned(w3.shape), pinned(b3.shape),
        ],
        out_specs=pl.BlockSpec((tb, packed_out), lambda i: (i, 0)),
        compiler_params=pltpu.CompilerParams(
            dimension_semantics=("parallel",),
            vmem_limit_bytes=32 * 1024 * 1024,
        ),
        cost_estimate=pl.CostEstimate(
            flops=flops, transcendentals=0, bytes_accessed=bytes_accessed),
    )(x_p, w1, b1, w2, b2, w3, b3)

    # Unfold back to (batch, out_dim) (free reshape) and drop padded rows.
    out = out_p.reshape(bp * fold, out_dim)
    return out[:batch] if pad else out


def init_params(key, in_dim, hidden_dims, out_dim):
    """Deterministic synthetic init (PyTorch Linear weight convention: (out, in))."""
    dims = [in_dim] + list(hidden_dims) + [out_dim]
    params = {}
    for i in range(len(dims) - 1):
        key, kw, kb = jax.random.split(key, 3)
        fan_in, fan_out = dims[i], dims[i + 1]
        bound = 1.0 / jnp.sqrt(fan_in)
        params[f"w{i+1}"] = jax.random.uniform(
            kw, (fan_out, fan_in), jnp.float32, -bound, bound)
        params[f"b{i+1}"] = jax.random.uniform(
            kb, (fan_out,), jnp.float32, -bound, bound)
    return params


def qnet_reference(x, params):
    """Plain-JAX f32 reference mirroring the PyTorch nn.Sequential."""
    h = jnp.maximum(x @ params["w1"].T + params["b1"], 0.0)
    h = jnp.maximum(h @ params["w2"].T + params["b2"], 0.0)
    return h @ params["w3"].T + params["b3"]


if __name__ == "__main__":
    # Small demo that still exercises a 2-step batch grid:
    # batch=512 -> fold=8 -> 64 packed rows -> 2 tiles of 32.
    batch, in_dim, hidden_dims, out_dim = 512, 16, [32, 32], 4

    key = jax.random.PRNGKey(0)
    key, kx = jax.random.split(key)
    x = jax.random.normal(kx, (batch, in_dim), jnp.float32)
    torch_params = init_params(key, in_dim, hidden_dims, out_dim)

    params = prepare_params(torch_params)  # one-time block-diag packing / bf16 cast

    y = qnet_forward(x, params)
    y = jax.block_until_ready(y)

    y_ref = qnet_reference(x, torch_params)
    assert y.shape == (batch, out_dim)
    # bf16 matmul operands in the hidden layers (f32 accumulate) -> loosened tol.
    max_err = float(jnp.max(jnp.abs(y - y_ref)))
    assert jnp.allclose(y, y_ref, atol=5e-2, rtol=5e-2), (
        f"mismatch vs reference (max abs err {max_err})")

    print("KERNEL_OK")
</pallas_src>

<mosaic_0001>
module attributes {stable_mosaic.version = 11 : i64} {
  func.func @_qnet_kernel(%arg0: i32, %arg1: memref<32x128xf32, #tpu.memory_space<vmem>>, %arg2: memref<128x256xbf16, #tpu.memory_space<vmem>>, %arg3: memref<1x256xf32, #tpu.memory_space<vmem>>, %arg4: memref<256x256xbf16, #tpu.memory_space<vmem>>, %arg5: memref<1x256xf32, #tpu.memory_space<vmem>>, %arg6: memref<256x32xf32, #tpu.memory_space<vmem>>, %arg7: memref<1x32xf32, #tpu.memory_space<vmem>>, %arg8: memref<32x32xf32, #tpu.memory_space<vmem>>) attributes {dimension_semantics = [#tpu.dimension_semantics<parallel>], iteration_bounds = array<i64: 2>, scalar_prefetch = 0 : i64, scratch_operands = 0 : i64, tpu.core_type = #tpu.core_type<tc>, window_params = [{transform_indices = @transform_0, window_bounds = array<i64: 32, 128>}, {pipeline_mode = #tpu.pipeline_mode<synchronous>, transform_indices = @transform_1, window_bounds = array<i64: 128, 256>}, {pipeline_mode = #tpu.pipeline_mode<synchronous>, transform_indices = @transform_2, window_bounds = array<i64: 1, 256>}, {pipeline_mode = #tpu.pipeline_mode<synchronous>, transform_indices = @transform_3, window_bounds = array<i64: 256, 256>}, {pipeline_mode = #tpu.pipeline_mode<synchronous>, transform_indices = @transform_4, window_bounds = array<i64: 1, 256>}, {pipeline_mode = #tpu.pipeline_mode<synchronous>, transform_indices = @transform_5, window_bounds = array<i64: 256, 32>}, {pipeline_mode = #tpu.pipeline_mode<synchronous>, transform_indices = @transform_6, window_bounds = array<i64: 1, 32>}, {transform_indices = @transform_7, window_bounds = array<i64: 32, 32>}]} {
    %c0 = arith.constant 0 : index
    %c0_0 = arith.constant 0 : index
    %0 = vector.load %arg1[%c0, %c0_0] : memref<32x128xf32, #tpu.memory_space<vmem>>, vector<32x128xf32>
    %1 = arith.truncf %0 : vector<32x128xf32> to vector<32x128xbf16>
    %c0_1 = arith.constant 0 : index
    %c0_2 = arith.constant 0 : index
    %2 = vector.load %arg2[%c0_1, %c0_2] : memref<128x256xbf16, #tpu.memory_space<vmem>>, vector<128x256xbf16>
    %cst = arith.constant dense<0.000000e+00> : vector<32x256xf32>
    %3 = tpu.matmul %1, %2, %cst {dimension_numbers = #tpu.dot_dimension_numbers<[1], [0], [0], [1], [0, 0, 1, 1], [], []>} : vector<32x128xbf16>, vector<128x256xbf16>, vector<32x256xf32> -> vector<32x256xf32>
    %c0_3 = arith.constant 0 : index
    %c0_4 = arith.constant 0 : index
    %4 = vector.load %arg3[%c0_3, %c0_4] : memref<1x256xf32, #tpu.memory_space<vmem>>, vector<1x256xf32>
    %5 = vector.broadcast %4 : vector<1x256xf32> to vector<32x256xf32>
    %6 = arith.addf %3, %5 : vector<32x256xf32>
    %cst_5 = arith.constant 0.000000e+00 : f32
    %7 = vector.broadcast %cst_5 : f32 to vector<32x256xf32>
    %8 = arith.maximumf %6, %7 : vector<32x256xf32>
    %9 = arith.truncf %8 : vector<32x256xf32> to vector<32x256xbf16>
    %c0_6 = arith.constant 0 : index
    %c0_7 = arith.constant 0 : index
    %10 = vector.load %arg4[%c0_6, %c0_7] : memref<256x256xbf16, #tpu.memory_space<vmem>>, vector<256x256xbf16>
    %cst_8 = arith.constant dense<0.000000e+00> : vector<32x256xf32>
    %11 = tpu.matmul %9, %10, %cst_8 {dimension_numbers = #tpu.dot_dimension_numbers<[1], [0], [0], [1], [0, 0, 1, 1], [], []>} : vector<32x256xbf16>, vector<256x256xbf16>, vector<32x256xf32> -> vector<32x256xf32>
    %c0_9 = arith.constant 0 : index
    %c0_10 = arith.constant 0 : index
    %12 = vector.load %arg5[%c0_9, %c0_10] : memref<1x256xf32, #tpu.memory_space<vmem>>, vector<1x256xf32>
    %13 = vector.broadcast %12 : vector<1x256xf32> to vector<32x256xf32>
    %14 = arith.addf %11, %13 : vector<32x256xf32>
    %cst_11 = arith.constant 0.000000e+00 : f32
    %15 = vector.broadcast %cst_11 : f32 to vector<32x256xf32>
    %16 = arith.maximumf %14, %15 : vector<32x256xf32>
    %c0_12 = arith.constant 0 : index
    %c0_13 = arith.constant 0 : index
    %17 = vector.load %arg6[%c0_12, %c0_13] : memref<256x32xf32, #tpu.memory_space<vmem>>, vector<256x32xf32>
    %cst_14 = arith.constant dense<0.000000e+00> : vector<32x32xf32>
    %18 = tpu.matmul %16, %17, %cst_14 {dimension_numbers = #tpu.dot_dimension_numbers<[1], [0], [0], [1], [0, 0, 1, 1], [], []>} : vector<32x256xf32>, vector<256x32xf32>, vector<32x32xf32> -> vector<32x32xf32>
    %c0_15 = arith.constant 0 : index
    %c0_16 = arith.constant 0 : index
    %19 = vector.load %arg7[%c0_15, %c0_16] : memref<1x32xf32, #tpu.memory_space<vmem>>, vector<1x32xf32>
    %20 = vector.broadcast %19 : vector<1x32xf32> to vector<32x32xf32>
    %21 = arith.addf %18, %20 : vector<32x32xf32>
    %c0_17 = arith.constant 0 : index
    %c0_18 = arith.constant 0 : index
    %22 = vector.load %arg8[%c0_17, %c0_18] : memref<32x32xf32, #tpu.memory_space<vmem>>, vector<32x32xf32>
    tpu.vector_store %arg8[%c0_17, %c0_18], %21 {strides = array<i32>} : memref<32x32xf32, #tpu.memory_space<vmem>>, vector<32x32xf32>,
    return
  }
  func.func @transform_0(%arg0: i32) -> (i32, i32) {
    %c0_i32 = arith.constant 0 : i32
    %c0_i32_0 = arith.constant 0 : i32
    return %arg0, %c0_i32 : i32, i32
  }
  func.func @transform_1(%arg0: i32) -> (i32, i32) {
    %c0_i32 = arith.constant 0 : i32
    %c0_i32_0 = arith.constant 0 : i32
    %c0_i32_1 = arith.constant 0 : i32
    return %c0_i32, %c0_i32_0 : i32, i32
  }
  func.func @transform_2(%arg0: i32) -> (i32, i32) {
    %c0_i32 = arith.constant 0 : i32
    %c0_i32_0 = arith.constant 0 : i32
    %c0_i32_1 = arith.constant 0 : i32
    return %c0_i32, %c0_i32_0 : i32, i32
  }
  func.func @transform_3(%arg0: i32) -> (i32, i32) {
    %c0_i32 = arith.constant 0 : i32
    %c0_i32_0 = arith.constant 0 : i32
    %c0_i32_1 = arith.constant 0 : i32
    return %c0_i32, %c0_i32_0 : i32, i32
  }
  func.func @transform_4(%arg0: i32) -> (i32, i32) {
    %c0_i32 = arith.constant 0 : i32
    %c0_i32_0 = arith.constant 0 : i32
    %c0_i32_1 = arith.constant 0 : i32
    return %c0_i32, %c0_i32_0 : i32, i32
  }
  func.func @transform_5(%arg0: i32) -> (i32, i32) {
    %c0_i32 = arith.constant 0 : i32
    %c0_i32_0 = arith.constant 0 : i32
    %c0_i32_1 = arith.constant 0 : i32
    return %c0_i32, %c0_i32_0 : i32, i32
  }
  func.func @transform_6(%arg0: i32) -> (i32, i32) {
    %c0_i32 = arith.constant 0 : i32
    %c0_i32_0 = arith.constant 0 : i32
    %c0_i32_1 = arith.constant 0 : i32
    return %c0_i32, %c0_i32_0 : i32, i32
  }
  func.func @transform_7(%arg0: i32) -> (i32, i32) {
    %c0_i32 = arith.constant 0 : i32
    %c0_i32_0 = arith.constant 0 : i32
    return %arg0, %c0_i32 : i32, i32
  }
}

</mosaic_0001>

<bundles_post_ra>
// kernel: qnet_forward.1
= control target key start
LH: loop header
LB: loop body
LE: loop exit
PB: predicated region body
PF: predicated region fallthrough
CT: control target
= control target key end

     0   :  { %s1178_s24 = smov 0   ;;  %s1457_s0 = inlined_call_operand.vmem [shape: f32[64,128], index: 0, kind: input, shape index: {}]   ;;  %s1458_s1 = inlined_call_operand.vmem [shape: bf16[128,256], index: 1, kind: input, shape index: {}]   ;;  %s1459_s2 = inlined_call_operand.vmem [shape: f32[1,256], index: 2, kind: input, shape index: {}]   ;;  %s1460_s3 = inlined_call_operand.vmem [shape: bf16[256,256], index: 3, kind: input, shape index: {}]   ;;  %s1461_s4 = inlined_call_operand.vmem [shape: f32[1,256], index: 4, kind: input, shape index: {}]   ;;  %s1462_s5 = inlined_call_operand.vmem [shape: f32[256,32], index: 5, kind: input, shape index: {}]   ;;  %s1463_s6 = inlined_call_operand.vmem [shape: f32[1,32], index: 6, kind: input, shape index: {}]   ;;  %s1464_s7 = inlined_call_operand.vmem [shape: f32[64,32], index: 7, kind: output, shape index: {}]  }
   0x1 LB: > { %s912_s25 = sadd.s32 4294967295, %s1135_s24   ;;  %p916_p0 = scmp.ge.s32.totalorder %s1135_s24, 1  ;;  %s1135_s24 = sphi %s1178_s24, %s17_s24  }
   0x2   : > { %p238_p1 = scmp.lt.s32.totalorder %s1135_s24, 3 }
   0x4   : > { %p239_p2 = pnand %p916_p0, %p238_p1 }
   0x5   : > { %v1057_v0 = vld [vmem:[%s1458_s1 + $0x4] ss:$8 sps:$4 sm:$0xff] (!%p239_p2)   ;;  %v1059_v1 = vld [vmem:[%s1458_s1] ss:$8 sps:$4 sm:$0xff] (!%p239_p2)   ;;  %v1137_v2 = vmov (!%p239_p2), 0   ;;  %s917_s17 = sshll.u32 (!%p239_p2), %s912_s25, 2 }
   0x6   : > { %242 = sbr.rel (%p239_p2) target bundleno = 708 (0x2c4), region = 48  ;;  %429 = vmatprep.mubr.bf16.mxu0 (!%p239_p2), %v1137_v2  ;;  %397 = vmatprep.subr.bf16.mxu0 (!%p239_p2), %v1057_v0  ;;  %v1060_v3 = vld [vmem:[%s1458_s1 + $0x14] ss:$8 sps:$4 sm:$0xff] (!%p239_p2)   ;;  %v1062_v4 = vld [vmem:[%s1458_s1 + $0x10] ss:$8 sps:$4 sm:$0xff] (!%p239_p2)   ;;  %p271_p3 = scmp.lt.s32.totalorder (!%p239_p2), %s917_s17, 7 }
   0x7   : > { %398 = vmatpush1.bf16.msra.mxu0 (!%p239_p2), %v1059_v1  ;;  %v1063_v5 = vld [vmem:[%s1458_s1 + $0x24] ss:$8 sps:$4 sm:$0xff] (!%p239_p2)   ;;  %v1065_v6 = vld [vmem:[%s1458_s1 + $0x20] ss:$8 sps:$4 sm:$0xff] (!%p239_p2)   ;;  %v1066_v7 = vld [vmem:[%s1458_s1 + $0x34] ss:$8 sps:$4 sm:$0xff] (!%p239_p2)  }
   0x8   : > { %399 = vmatprep.subr.bf16.mxu0 (!%p239_p2), %v1060_v3  ;;  %v1068_v8 = vld [vmem:[%s1458_s1 + $0x30] ss:$8 sps:$4 sm:$0xff] (!%p239_p2)   ;;  %v1069_v9 = vld [vmem:[%s1458_s1 + $0x44] ss:$8 sps:$4 sm:$0xff] (!%p239_p2)   ;;  %v1083_v11 = vld [vmem:[%s1460_s3] ss:$8 sps:$4 sm:$0xff] (!%p239_p2)  }
   0x9   : > { %v1081_v10 = vld [vmem:[%s1460_s3 + $0x4] ss:$8 sps:$4 sm:$0xff] (!%p239_p2)   ;;  %v1071_v12 = vld [vmem:[%s1458_s1 + $0x40] ss:$8 sps:$4 sm:$0xff] (!%p239_p2)   ;;  %v1084_v13 = vld [vmem:[%s1460_s3 + $0x14] ss:$8 sps:$4 sm:$0xff] (!%p239_p2)  }
   0xa   : > { %666 = vmatprep.subr.bf16.mxu1 (!%p239_p2), %v1081_v10  ;;  %v1072_v14 = vld [vmem:[%s1458_s1 + $0x54] ss:$8 sps:$4 sm:$0xff] (!%p239_p2)   ;;  %v1086_v15 = vld [vmem:[%s1460_s3 + $0x10] ss:$8 sps:$4 sm:$0xff] (!%p239_p2)   ;;  %v1087_v16 = vld [vmem:[%s1460_s3 + $0x24] ss:$8 sps:$4 sm:$0xff] (!%p239_p2)  }
   0xb   : > { %400 = vmatpush1.bf16.msra.mxu0 (!%p239_p2), %v1062_v4  ;;  %667 = vmatpush1.bf16.msra.mxu1 (!%p239_p2), %v1083_v11  ;;  %v1074_v17 = vld [vmem:[%s1458_s1 + $0x50] ss:$8 sps:$4 sm:$0xff] (!%p239_p2)   ;;  %v1075_v18 = vld [vmem:[%s1458_s1 + $0x64] ss:$8 sps:$4 sm:$0xff] (!%p239_p2)   ;;  %v1089_v19 = vld [vmem:[%s1460_s3 + $0x20] ss:$8 sps:$4 sm:$0xff] (!%p239_p2)  }
   0xc   : > { %401 = vmatprep.subr.bf16.mxu0 (!%p239_p2), %v1063_v5  ;;  %668 = vmatprep.subr.bf16.mxu1 (!%p239_p2), %v1084_v13  ;;  %v1090_v20 = vld [vmem:[%s1460_s3 + $0x34] ss:$8 sps:$4 sm:$0xff] (!%p239_p2)   ;;  %v1077_v21 = vld [vmem:[%s1458_s1 + $0x60] ss:$8 sps:$4 sm:$0xff] (!%p239_p2)   ;;  %v1092_v23 = vld [vmem:[%s1460_s3 + $0x30] ss:$8 sps:$4 sm:$0xff] (!%p239_p2)  }
   0xd   : > { %s1466_s17 = smov (!%p271_p3, %s917_s17), 7  ;;  %v1078_v22 = vld [vmem:[%s1458_s1 + $0x74] ss:$8 sps:$4 sm:$0xff]   ;;  %v1093_v24 = vld [vmem:[%s1460_s3 + $0x44] ss:$8 sps:$4 sm:$0xff]   ;;  %vm851_vm0 = vcmask 261120  }
   0xe   : > { %s918_s21 = sshll.u32 %s1466_s17, 3  ;;  %v1080_v25 = vld [vmem:[%s1458_s1 + $0x70] ss:$8 sps:$4 sm:$0xff]   ;;  %v1095_v28 = vld [vmem:[%s1460_s3 + $0x40] ss:$8 sps:$4 sm:$0xff]  }
   0xf   : > { %402 = vmatpush1.bf16.msra.mxu0 %v1065_v6  ;;  %669 = vmatpush1.bf16.msra.mxu1 %v1086_v15  ;;  %s274_s8 = scalar_lea.vmem %s1457_s0, %s918_s21  ;;  %v1096_v29 = vld [vmem:[%s1460_s3 + $0x54] ss:$8 sps:$4 sm:$0xff]   ;;  %v1098_v31 = vld [vmem:[%s1460_s3 + $0x50] ss:$8 sps:$4 sm:$0xff]   ;;  %v1099_v32 = vld [vmem:[%s1460_s3 + $0x64] ss:$8 sps:$4 sm:$0xff]   ;;  %s280_s13 = scalar_lea.vmem %s1464_s7, %s918_s21 }
  0x10   : > { %403 = vmatprep.subr.bf16.mxu0 %v1066_v7  ;;  %670 = vmatprep.subr.bf16.mxu1 %v1087_v16  ;;  %v283_v26 = vld [vmem:[%s274_s8] sm:$0xff]  ;;  %v284_v27 = vld [vmem:[%s274_s8 + $0x8] sm:$0xff]  ;;  %v285_v33 = vld [vmem:[%s274_s8 + $0x10] sm:$0xff] }
  0x11   : > { %v287_v30 = vpack.c.bf16 %v284_v27, %v283_v26  ;;  %v286_v34 = vld [vmem:[%s274_s8 + $0x18] sm:$0xff]  ;;  %v1101_v35 = vld [vmem:[%s1460_s3 + $0x60] ss:$8 sps:$4 sm:$0xff]   ;;  %v1105_v39 = vld [vmem:[%s1460_s3 + $0x84] ss:$8 sps:$4 sm:$0xff]  }
  0x12   : > { %v1102_v36 = vld [vmem:[%s1460_s3 + $0x74] ss:$8 sps:$4 sm:$0xff]   ;;  %v288_v37 = vpack.c.bf16 %v286_v34, %v285_v33  ;;  %v1104_v38 = vld [vmem:[%s1460_s3 + $0x70] ss:$8 sps:$4 sm:$0xff]   ;;  %v1107_v40 = vld [vmem:[%s1460_s3 + $0x80] ss:$8 sps:$4 sm:$0xff]  }
  0x13   : > { %404 = vmatpush1.bf16.msra.mxu0 %v1068_v8  ;;  %671 = vmatpush1.bf16.msra.mxu1 %v1089_v19  ;;  %v1108_v41 = vld [vmem:[%s1460_s3 + $0x94] ss:$8 sps:$4 sm:$0xff]   ;;  %v1110_v42 = vld [vmem:[%s1460_s3 + $0x90] ss:$8 sps:$4 sm:$0xff]   ;;  %v1111_v43 = vld [vmem:[%s1460_s3 + $0xa4] ss:$8 sps:$4 sm:$0xff]  }
  0x14   : > { %405 = vmatprep.subr.bf16.mxu0 %v1069_v9  ;;  %672 = vmatprep.subr.bf16.mxu1 %v1090_v20  ;;  %v1113_v44 = vld [vmem:[%s1460_s3 + $0xa0] ss:$8 sps:$4 sm:$0xff]   ;;  %v1114_v45 = vld [vmem:[%s1460_s3 + $0xb4] ss:$8 sps:$4 sm:$0xff]   ;;  %v1116_v46 = vld [vmem:[%s1460_s3 + $0xb0] ss:$8 sps:$4 sm:$0xff]  }
  0x15   : > { %v1117_v47 = vld [vmem:[%s1460_s3 + $0xc4] ss:$8 sps:$4 sm:$0xff]   ;;  %v1119_v48 = vld [vmem:[%s1460_s3 + $0xc0] ss:$8 sps:$4 sm:$0xff]   ;;  %v1120_v49 = vld [vmem:[%s1460_s3 + $0xd4] ss:$8 sps:$4 sm:$0xff]  }
  0x16   : > { %v1122_v50 = vld [vmem:[%s1460_s3 + $0xd0] ss:$8 sps:$4 sm:$0xff]   ;;  %v1123_v51 = vld [vmem:[%s1460_s3 + $0xe4] ss:$8 sps:$4 sm:$0xff]   ;;  %v1125_v52 = vld [vmem:[%s1460_s3 + $0xe0] ss:$8 sps:$4 sm:$0xff]  }
  0x17   : > { %406 = vmatpush1.bf16.msra.mxu0 %v1071_v12  ;;  %673 = vmatpush1.bf16.msra.mxu1 %v1092_v23  ;;  %v1126_v53 = vld [vmem:[%s1460_s3 + $0xf4] ss:$8 sps:$4 sm:$0xff]   ;;  %v1128_v54 = vld [vmem:[%s1460_s3 + $0xf0] ss:$8 sps:$4 sm:$0xff]   ;;  %v743_v55 = vld [vmem:[%s1462_s5 + $0x80] sm:$0xff] }
  0x18   : > { %407 = vmatprep.subr.bf16.mxu0 %v1072_v14  ;;  %674 = vmatprep.subr.bf16.mxu1 %v1093_v24  ;;  %v744_v56 = vld [vmem:[%s1462_s5 + $0x88] sm:$0xff]  ;;  %v727_v57 = vld [vmem:[%s1462_s5] sm:$0xff]  ;;  %v745_v60 = vld [vmem:[%s1462_s5 + $0x90] sm:$0xff] }
  0x19   : > { %v1016_v58 = vpack.c.bf16 %v744_v56, %v743_v55  ;;  %v728_v59 = vld [vmem:[%s1462_s5 + $0x8] sm:$0xff]  ;;  %v746_v61 = vld [vmem:[%s1462_s5 + $0x98] sm:$0xff]  ;;  %v729_v0 = vld [vmem:[%s1462_s5 + $0x10] sm:$0xff] }
  0x1a   : > { %v1018_v62 = vpack.c.bf16 %v728_v59, %v727_v57  ;;  %v1020_v63 = vpack.c.bf16 %v746_v61, %v745_v60  ;;  %v730_v1 = vld [vmem:[%s1462_s5 + $0x18] sm:$0xff]  ;;  %v748_v3 = vld [vmem:[%s1462_s5 + $0xa8] sm:$0xff]  ;;  %v731_v6 = vld [vmem:[%s1462_s5 + $0x20] sm:$0xff] }
  0x1b   : > { %408 = vmatpush1.bf16.msra.mxu0 %v1074_v17  ;;  %675 = vmatpush1.bf16.msra.mxu1 %v1095_v28  ;;  %v1022_v4 = vpack.c.bf16 %v730_v1, %v729_v0  ;;  %v732_v7 = vld [vmem:[%s1462_s5 + $0x28] sm:$0xff]  ;;  %v749_v8 = vld [vmem:[%s1462_s5 + $0xb0] sm:$0xff]  ;;  %v750_v9 = vld [vmem:[%s1462_s5 + $0xb8] sm:$0xff] }
  0x1c   : > { %409 = vmatprep.subr.bf16.mxu0 %v1075_v18  ;;  %676 = vmatprep.subr.bf16.mxu1 %v1096_v29  ;;  %v1026_v10 = vpack.c.bf16 %v732_v7, %v731_v6  ;;  %v1028_v11 = vpack.c.bf16 %v750_v9, %v749_v8  ;;  %v733_v12 = vld [vmem:[%s1462_s5 + $0x30] sm:$0xff]  ;;  %v734_v13 = vld [vmem:[%s1462_s5 + $0x38] sm:$0xff]  ;;  %v751_v14 = vld [vmem:[%s1462_s5 + $0xc0] sm:$0xff] }
  0x1d   : > { %v752_v15 = vld [vmem:[%s1462_s5 + $0xc8] sm:$0xff]  ;;  %v1030_v16 = vpack.c.bf16 %v734_v13, %v733_v12  ;;  %v735_v18 = vld [vmem:[%s1462_s5 + $0x40] sm:$0xff]  ;;  %v753_v20 = vld [vmem:[%s1462_s5 + $0xd0] sm:$0xff] }
  0x1e   : > { %v1032_v17 = vpack.c.bf16 %v752_v15, %v751_v14  ;;  %v736_v19 = vld [vmem:[%s1462_s5 + $0x48] sm:$0xff]  ;;  %v737_v24 = vld [vmem:[%s1462_s5 + $0x50] sm:$0xff]  ;;  %v755_v26 = vld [vmem:[%s1462_s5 + $0xe0] sm:$0xff] }
  0x1f   : > { %410 = vmatpush1.bf16.msra.mxu0 %v1077_v21  ;;  %677 = vmatpush1.bf16.msra.mxu1 %v1098_v31  ;;  %v754_v21 = vld [vmem:[%s1462_s5 + $0xd8] sm:$0xff]  ;;  %v756_v27 = vld [vmem:[%s1462_s5 + $0xe8] sm:$0xff]  ;;  %v305_v33 = vld [vmem:[%s1459_s2] sm:$0x3] }
  0x20   : > { %411 = vmatprep.subr.bf16.mxu0 %v1078_v22  ;;  %678 = vmatprep.subr.bf16.mxu1 %v1099_v32  ;;  %v1034_v22 = vpack.c.bf16 %v736_v19, %v735_v18  ;;  %v1036_v23 = vpack.c.bf16 %v754_v21, %v753_v20  ;;  %v1040_v29 = vpack.c.bf16 %v756_v27, %v755_v26  ;;  %v739_v1 = vld [vmem:[%s1462_s5 + $0x60] sm:$0xff]  ;;  %v741_v7 = vld [vmem:[%s1462_s5 + $0x70] sm:$0xff]  ;;  %v742_v8 = vld [vmem:[%s1462_s5 + $0x78] sm:$0xff] }
  0x21   : > { %v1046_v9 = vpack.c.bf16 %v742_v8, %v741_v7 }
  0x23   : > { %412 = vmatpush1.bf16.msra.mxu0 %v1080_v25  ;;  %679 = vmatpush1.bf16.msra.mxu1 %v1101_v35  ;;  %v738_v25 = vld [vmem:[%s1462_s5 + $0x58] sm:$0xff] }
  0x24   : > { %680 = vmatprep.subr.bf16.mxu1 %v1102_v36  ;;  %1017 = vmatprep.subr.bf16.mxu0 %v1016_v58  ;;  %v1038_v28 = vpack.c.bf16 %v738_v25, %v737_v24 }
  0x26   : > { %430 = vmatmul.mubr.bf16.vlgmr.msra.gmra.mrb[0].mxu0 %v287_v30  ;;  %v307_v30 = vlaneseq }
  0x27   : > { %439 = vmatprep.mubr.bf16.mxu0 %v1137_v2  ;;  %681 = vmatpush1.bf16.msra.mxu1 %v1104_v38  ;;  %v747_v2 = vld [vmem:[%s1462_s5 + $0xa0] sm:$0xff] }
  0x28   : > { %682 = vmatprep.subr.bf16.mxu1 %v1105_v39  ;;  %1019 = vmatpush3.bf16.msra.mxu0 %v1018_v62  ;;  %v1024_v5 = vpack.c.bf16 %v748_v3, %v747_v2  ;;  %v308_v31 = vshrl.u32 %v307_v30, 7  ;;  %v740_v2 = vld [vmem:[%s1462_s5 + $0x68] sm:$0xff] }
  0x29   : > { %1021 = vmatprep.subr.bf16.mxu0 %v1020_v63  ;;  %v1042_v3 = vpack.c.bf16 %v740_v2, %v739_v1 }
  0x2a   : > { %v309_v32 = vsub.s32 0, %v308_v31  ;;  %v313_v34 = vsub.s32 1, %v308_v31 }
  0x2b   : > { %683 = vmatpush1.bf16.msra.mxu1 %v1107_v40 }
  0x2c   : > { %684 = vmatprep.subr.bf16.mxu1 %v1108_v41  ;;  %1023 = vmatpush3.bf16.msra.mxu0 %v1022_v4  ;;  %v310_v35 = vrot.slane %v305_v33, %v309_v32  ;;  %v314_v36 = vrot.slane %v305_v33, %v313_v34  ;;  %v757_v4 = vld [vmem:[%s1462_s5 + $0xf0] sm:$0xff] }
  0x2d   : > { %1025 = vmatprep.subr.bf16.mxu0 %v1024_v5  ;;  %v758_v5 = vld [vmem:[%s1462_s5 + $0xf8] sm:$0xff] }
  0x2e   : > { %440 = vmatmul.mubr.bf16.gmra.mrb[4].mxu0 %v288_v37  ;;  %v1044_v6 = vpack.c.bf16 %v758_v5, %v757_v4 }
  0x2f   : > { %685 = vmatpush1.bf16.msra.mxu1 %v1110_v42 }
  0x30   : > { %686 = vmatprep.subr.bf16.mxu1 %v1111_v43  ;;  %1027 = vmatpush3.bf16.msra.mxu0 %v1026_v10  ;;  %v494_v10 = vld [vmem:[%s1461_s4] sm:$0x3] }
  0x31   : > { %1029 = vmatprep.subr.bf16.mxu0 %v1028_v11  ;;  %v499_v11 = vrot.slane %v494_v10, %v309_v32  ;;  %v503_v12 = vrot.slane %v494_v10, %v313_v34 }
  0x33   : > { %687 = vmatpush1.bf16.msra.mxu1 %v1113_v44 }
  0x34   : > { %688 = vmatprep.subr.bf16.mxu1 %v1114_v45  ;;  %1031 = vmatpush3.bf16.msra.mxu0 %v1030_v16 }
  0x35   : > { %1033 = vmatprep.subr.bf16.mxu0 %v1032_v17 }
  0x37   : > { %689 = vmatpush1.bf16.msra.mxu1 %v1116_v46 }
  0x38   : > { %690 = vmatprep.subr.bf16.mxu1 %v1117_v47  ;;  %1035 = vmatpush3.bf16.msra.mxu0 %v1034_v22 }
  0x39   : > { %1037 = vmatprep.subr.bf16.mxu0 %v1036_v23 }
  0x3b   : > { %691 = vmatpush1.bf16.msra.mxu1 %v1119_v48 }
  0x3c   : > { %692 = vmatprep.subr.bf16.mxu1 %v1120_v49  ;;  %1039 = vmatpush3.bf16.msra.mxu0 %v1038_v28 }
  0x3d   : > { %1041 = vmatprep.subr.bf16.mxu0 %v1040_v29 }
  0x3f   : > { %693 = vmatpush1.bf16.msra.mxu1 %v1122_v50 }
  0x40   : > { %694 = vmatprep.subr.bf16.mxu1 %v1123_v51  ;;  %1043 = vmatpush3.bf16.msra.mxu0 %v1042_v3 }
  0x41   : > { %1045 = vmatprep.subr.bf16.mxu0 %v1044_v6 }
  0x43   : > { %695 = vmatpush1.bf16.msra.mxu1 %v1125_v52 }
  0x44   : > { %696 = vmatprep.subr.bf16.mxu1 %v1126_v53  ;;  %1047 = vmatpush3.bf16.msra.mxu0 %v1046_v9 }
  0x47   : > { %697 = vmatpush1.bf16.msra.mxu1 %v1128_v54 }
  0xf9   : > { %v431_v37 = vpop.f32.mrb[0].mxu0 }
  0xfa   : > { %v432_v38 = vadd.f32 %v431_v37, %v310_v35  ;;  %v433_v39 = vpop.f32.mrb[1].mxu0 }
  0xfb   : > { %v434_v40 = vadd.f32 %v433_v39, %v314_v36  ;;  %v435_v41 = vpop.f32.mrb[2].mxu0 }
  0xfc   : > { %v436_v42 = vadd.f32 %v435_v41, %v310_v35  ;;  %v437_v43 = vpop.f32.mrb[3].mxu0  ;;  %v450_v45 = vmax.f32 %v432_v38, 0.0  ;;  %v969_v38 = vld [vmem:[%s1463_s6] ss:$0 sm:$0xff] }
  0xfd   : > { %v438_v44 = vadd.f32 %v437_v43, %v314_v36  ;;  %v451_v47 = vmax.f32 %v434_v40, 0.0 }
  0xfe   : > { %v452_v46 = vmax.f32 %v436_v42, 0.0 }
  0xff   : > { %v453_v48 = vmax.f32 %v438_v44, 0.0 }
 0x100   : > { %v458_v49 = vpack.c.bf16 %v452_v46, %v450_v45 }
 0x101   : > { %v441_v50 = vpop.f32.mrb[4].mxu0  ;;  %v459_v51 = vpack.c.bf16 %v453_v48, %v451_v47 }
 0x102   : > { %v442_v52 = vadd.f32 %v441_v50, %v310_v35  ;;  %v443_v53 = vpop.f32.mrb[5].mxu0 }
 0x103   : > { %v444_v54 = vadd.f32 %v443_v53, %v314_v36  ;;  %v445_v55 = vpop.f32.mrb[6].mxu0  ;;  %698 = vmatprep.mubr.bf16.mxu1 %v459_v51 }
 0x104   : > { %v446_v56 = vadd.f32 %v445_v55, %v310_v35  ;;  %v447_v57 = vpop.f32.mrb[7].mxu0  ;;  %699 = vmatmul.mubr.bf16.vlgmr.msra.gmra.mrb[0].mxu1 %v458_v49  ;;  %v454_v59 = vmax.f32 %v442_v52, 0.0 }
 0x105   : > { %v448_v58 = vadd.f32 %v447_v57, %v314_v36  ;;  %v455_v61 = vmax.f32 %v444_v54, 0.0 }
 0x106   : > { %v456_v60 = vmax.f32 %v446_v56, 0.0 }
 0x107   : > { %v457_v62 = vmax.f32 %v448_v58, 0.0 }
 0x108   : > { %v460_v63 = vpack.c.bf16 %v456_v60, %v454_v59 }
 0x109   : > { %v461_v0 = vpack.c.bf16 %v457_v62, %v455_v61 }
 0x10b   : > { %708 = vmatprep.mubr.bf16.mxu1 %v461_v0 }
 0x10c   : > { %709 = vmatmul.mubr.bf16.gmra.mrb[4].mxu1 %v460_v63 }
 0x1d7   : > { %v700_v13 = vpop.f32.mrb[0].mxu1 }
 0x1d8   : > { %v701_v14 = vadd.f32 %v700_v13, %v499_v11  ;;  %v702_v15 = vpop.f32.mrb[1].mxu1 }
 0x1d9   : > { %v703_v16 = vadd.f32 %v702_v15, %v503_v12  ;;  %v704_v17 = vpop.f32.mrb[2].mxu1 }
 0x1da   : > { %v706_v18 = vpop.f32.mrb[3].mxu1  ;;  %v719_v21 = vmax.f32 %v701_v14, 0.0  ;;  %v705_v22 = vadd.f32 %v704_v17, %v499_v11 }
 0x1db   : > { %v720_v19 = vmax.f32 %v703_v16, 0.0  ;;  %v707_v20 = vadd.f32 %v706_v18, %v503_v12 }
 0x1dc   : > { %v721_v25 = vmax.f32 %v705_v22, 0.0 }
 0x1dd   : > { %v722_v23 = vmax.f32 %v707_v20, 0.0  ;;  %830 = vmatprep.mubr.f32.mxu0 %v720_v19 }
 0x1de   : > { %831 = vmatmul.mubr.f32.vlgmr.msra.gmra.mrb[8].mxu0 %v719_v21 }
 0x1df   : > { %v710_v24 = vpop.f32.mrb[4].mxu1  ;;  %835 = vmatprep.mubr.f32.mxu0 %v722_v23 }
 0x1e0   : > { %v711_v26 = vadd.f32 %v710_v24, %v499_v11  ;;  %v712_v27 = vpop.f32.mrb[5].mxu1 }
 0x1e1   : > { %v713_v28 = vadd.f32 %v712_v27, %v503_v12  ;;  %v714_v29 = vpop.f32.mrb[6].mxu1 }
 0x1e2   : > { %v716_v30 = vpop.f32.mrb[7].mxu1  ;;  %836 = vmatmul.mubr.f32.gmra.mrb[10].mxu0 %v721_v25  ;;  %v723_v33 = vmax.f32 %v711_v26, 0.0  ;;  %v715_v34 = vadd.f32 %v714_v29, %v499_v11 }
 0x1e3   : > { %v724_v31 = vmax.f32 %v713_v28, 0.0  ;;  %v717_v32 = vadd.f32 %v716_v30, %v503_v12 }
 0x1e4   : > { %v725_v36 = vmax.f32 %v715_v34, 0.0 }
 0x1e5   : > { %v726_v35 = vmax.f32 %v717_v32, 0.0  ;;  %840 = vmatprep.mubr.f32.mxu0 %v724_v31 }
 0x1e6   : > { %841 = vmatmul.mubr.f32.gmra.mrb[12].mxu0 %v723_v33 }
 0x1e7   : > { %845 = vmatprep.mubr.f32.mxu0 %v726_v35 }
 0x1ea   : > { %846 = vmatmul.mubr.f32.gmra.mrb[14].mxu0 %v725_v36 }
 0x2b1   : > { %v1004_v37 = vpop.f32.mrb[8].mxu0 }
 0x2b2   : > { %v1005_v39 = vpop.f32.mrb[9].mxu0 }
 0x2b3   : > { %v1006_v40 = vadd.f32 %v1005_v39, %v1004_v37 }
 0x2b5   : > { %v833_v41 = vadd.f32 %v1006_v40, %v969_v38  ;;  %v1007_v42 = vpop.f32.mrb[10].mxu0 }
 0x2b6   : > { %v1008_v43 = vpop.f32.mrb[11].mxu0 }
 0x2b7   : > { %852 = vst.msk [vmem:[%s280_s13] sm:$0xff] %vm851_vm0, %v833_v41  ;;  %v1009_v44 = vadd.f32 %v1008_v43, %v1007_v42 }
 0x2b9   : > { %v838_v45 = vadd.f32 %v1009_v44, %v969_v38  ;;  %v1010_v46 = vpop.f32.mrb[12].mxu0 }
 0x2ba   : > { %v1011_v47 = vpop.f32.mrb[13].mxu0 }
 0x2bb   : > { %853 = vst.msk [vmem:[%s280_s13 + $0x8] sm:$0xff] %vm851_vm0, %v838_v45  ;;  %v1012_v48 = vadd.f32 %v1011_v47, %v1010_v46 }
 0x2bd   : > { %v843_v49 = vadd.f32 %v1012_v48, %v969_v38  ;;  %v1013_v50 = vpop.f32.mrb[14].mxu0 }
 0x2be   : > { %v1014_v51 = vpop.f32.mrb[15].mxu0 }
 0x2bf   : > { %854 = vst.msk [vmem:[%s280_s13 + $0x10] sm:$0xff] %vm851_vm0, %v843_v49  ;;  %v1015_v52 = vadd.f32 %v1014_v51, %v1013_v50 }
 0x2c1   : > { %v848_v53 = vadd.f32 %v1015_v52, %v969_v38 }
 0x2c3   : > { %855 = vst.msk [vmem:[%s280_s13 + $0x18] sm:$0xff] %vm851_vm0, %v848_v53 }
 0x2c4 PF: > { %s17_s24 = sadd.s32 1, %s1135_s24  }
 0x2c5   : > { %p14_p4 = scmp.ge.s32.totalorder %s17_s24, 4  }
 0x2c7   :  { %16 = sbr.rel (!%p14_p4) target bundleno = 1 (0x1), region = 78 }

</bundles_post_ra>
